<compile_context>
chip_gen: v5e
topology: v5e:2x2
jax: 0.10.0
libtpu: 0.0.40
codegen_flags: <defaults>
</compile_context>

<pallas_src>
import numpy as np
import jax
import jax.numpy as jnp
from jax.experimental import pallas as pl
from jax.experimental.pallas import tpu as pltpu

# ---- static eKAN / KANLinear configuration (module defaults) ----
GRID_SIZE = 3
SPLINE_ORDER = 2
GRID_RANGE = (-1.0, 1.0)
_STEP = (GRID_RANGE[1] - GRID_RANGE[0]) / GRID_SIZE
# uniform knot vector shared by every input feature (grid_size + 2*spline_order + 1 knots)
KNOTS = tuple(GRID_RANGE[0] + (i - SPLINE_ORDER) * _STEP
              for i in range(GRID_SIZE + 2 * SPLINE_ORDER + 1))
N_BASIS = GRID_SIZE + SPLINE_ORDER   # B-spline basis functions per input feature


def _round_up(a, b):
    return (a + b - 1) // b * b


def _bspline_bases(u):
    """Reference-only Cox-de Boor recursion (mirrors efficient-kan's b_splines)."""
    ge = [u >= k for k in KNOTS]
    bases = [jnp.where(ge[j] & (~ge[j + 1]), 1.0, 0.0).astype(jnp.float32)
             for j in range(len(KNOTS) - 1)]
    for k in range(1, SPLINE_ORDER + 1):
        nxt = []
        for j in range(len(bases) - 1):
            left = (u - KNOTS[j]) * (1.0 / (KNOTS[j + k] - KNOTS[j])) * bases[j]
            right = (KNOTS[j + k + 1] - u) * (1.0 / (KNOTS[j + k + 1] - KNOTS[j + 1])) * bases[j + 1]
            nxt.append(left + right)
        bases = nxt
    return bases


def node_embedding_kernel(x_ref, ctx_ref, wpk_ref,
                          wn_ref, bn_ref, wc_ref, bc_ref, wu_ref, bu_ref,
                          base_w_ref, spline_w_ref, out_ref):
    tile_n, c_max, f_dim = ctx_ref.shape
    cdt = wn_ref.dtype                       # MXU operand dtype (f32 or bf16)

    x = x_ref[...]                           # (TILE_N, F) f32
    wpk = wpk_ref[...]                       # (TILE_N, C_MAX + 2) f32
    w_slots = wpk[:, :c_max]                 # attn * (j < count) / max(count, 1)
    bc_scale = wpk[:, c_max:c_max + 1]       # sum_j attn_j / count  (bias weighting)
    has_ctx = wpk[:, c_max + 1:c_max + 2]    # 1.0 iff count > 0

    # attention-weighted mean over context slots BEFORE the matmul (VPU + sublane reduce)
    ctx = ctx_ref[...].astype(jnp.float32)                       # (TILE_N, C_MAX, F)
    agg_ctx = jnp.sum(ctx * w_slots[:, :, None], axis=1)         # (TILE_N, F) f32

    # node_transform + (pre-aggregated) context_transform (MXU, f32 accumulation)
    xt = jnp.dot(x.astype(cdt), wn_ref[...],
                 preferred_element_type=jnp.float32) + bn_ref[...]
    ct = jnp.dot(agg_ctx.astype(cdt), wc_ref[...],
                 preferred_element_type=jnp.float32) + bc_scale * bc_ref[...]

    # update_transform
    upd = jnp.dot((xt + ct).astype(cdt), wu_ref[...],
                  preferred_element_type=jnp.float32) + bu_ref[...]        # (TILE_N, O)

    # eKAN: single KANLinear(O -> O), no bias.  SiLU base path + B-spline path.
    silu = upd * jax.nn.sigmoid(upd)
    acc = jnp.dot(silu.astype(cdt), base_w_ref[...],
                  preferred_element_type=jnp.float32)

    # closed-form cardinal quadratic B-spline basis on the uniform knot grid:
    #   u in knot-index coordinates, c = floor(u), f = frac(u);
    #   basis_j(x) = f^2/2 if c==j; 0.5+f-f^2 if c==j+1; (1-f)^2/2 if c==j+2; else 0.
    u = (upd - KNOTS[0]) * (1.0 / _STEP)
    cidx = jnp.floor(u)
    f = u - cidx
    v0 = 0.5 * f * f
    v1 = 0.5 + f * (1.0 - f)
    v2 = 0.5 * (1.0 - f) * (1.0 - f)
    for j in range(N_BASIS):                  # accumulate N_BASIS small matmuls (no concat)
        cj = cidx - float(j)
        bj = jnp.where(cj == 0.0, v0,
             jnp.where(cj == 1.0, v1,
             jnp.where(cj == 2.0, v2, 0.0)))
        acc = acc + jnp.dot(bj.astype(cdt), spline_w_ref[j],
                            preferred_element_type=jnp.float32)

    # nodes with no contexts pass their raw features through exactly (requires F == O)
    out_ref[...] = jnp.where(has_ctx > 0.0, acc, x)


def node_embedding_layer(x, contexts, attn, counts, params, *, c_max,
                         tile_n=256, compute_dtype=jnp.float32):
    """x: (N, F); contexts: (N, C_MAX, F); attn: (N, C_MAX); counts: (N,) int."""
    N, F = x.shape
    H = params["wn_t"].shape[1]
    O = params["wu_t"].shape[1]
    assert F == O, "passthrough branch requires num_features == output_dim (torch.stack)"
    cdt = compute_dtype

    # node tiling (only the node axis is ever padded; feature dims stay as-is)
    tile_n = _round_up(max(8, min(tile_n, _round_up(N, 8))), 8)
    N_pad = _round_up(N, tile_n)

    # per-node scalars, packed lane-dense: [w_0..w_{C-1}, bias_scale, has_ctx]
    cnt = counts.astype(jnp.float32).reshape(N, 1)
    valid = (jnp.arange(c_max, dtype=jnp.float32)[None, :] < cnt).astype(jnp.float32)
    inv_cnt = 1.0 / jnp.maximum(cnt, 1.0)                 # exact mean (no approx recip)
    w_slots = attn.astype(jnp.float32) * valid * inv_cnt  # (N, C_MAX)
    bc_scale = jnp.sum(w_slots, axis=1, keepdims=True)    # (N, 1)
    has_ctx = (cnt > 0.0).astype(jnp.float32)             # (N, 1)
    wpack = jnp.concatenate([w_slots, bc_scale, has_ctx], axis=1)   # (N, C_MAX+2)

    x_f32 = x.astype(jnp.float32)                          # stays f32 -> exact passthrough
    ctx = contexts if contexts.dtype == cdt else contexts.astype(cdt)

    if N_pad != N:   # pad along the node axis only (no-op when N is tile-aligned)
        x_f32 = jnp.zeros((N_pad, F), jnp.float32).at[:N].set(x_f32)
        ctx = jnp.zeros((N_pad, c_max, F), ctx.dtype).at[:N].set(ctx)
        wpack = jnp.zeros((N_pad, c_max + 2), jnp.float32).at[:N].set(wpack)

    # small weight matrices, kernel orientation (in, out); biases stay f32
    wn_p = params["wn_t"].astype(cdt)
    bn_p = params["bn"].astype(jnp.float32)
    wc_p = params["wc_t"].astype(cdt)
    bc_p = params["bc"].astype(jnp.float32)
    wu_p = params["wu_t"].astype(cdt)
    bu_p = params["bu"].astype(jnp.float32)
    bw_p = params["base_w_t"].astype(cdt)
    sw_p = params["spline_w_packed"].astype(cdt)           # (N_BASIS, O, O)

    item_ctx = jnp.dtype(ctx.dtype).itemsize
    item_w = jnp.dtype(cdt).itemsize
    flops = int(N_pad) * (2 * c_max * F                     # weighted slot aggregation
                          + 2 * F * H * 2                   # node + context transforms
                          + 2 * H * O                       # update transform
                          + 2 * O * O * (1 + N_BASIS)       # KAN base + spline matmuls
                          + 20 * O)                         # silu + spline basis (approx)
    transcendentals = int(N_pad) * O                        # sigmoid
    bytes_accessed = (N_pad * F * 4 + N_pad * c_max * F * item_ctx
                      + N_pad * (c_max + 2) * 4 + N_pad * O * 4
                      + (2 * F * H + H * O + O * O * (1 + N_BASIS)) * item_w
                      + (2 * H + O) * 4)

    grid = (N_pad // tile_n,)   # keep an even tile count when possible for v7x megacore
    out = pl.pallas_call(
        node_embedding_kernel,
        out_shape=jax.ShapeDtypeStruct((N_pad, O), jnp.float32),
        grid=grid,
        in_specs=[
            pl.BlockSpec((tile_n, F), lambda i: (i, 0)),              # x
            pl.BlockSpec((tile_n, c_max, F), lambda i: (i, 0, 0)),    # contexts (orig layout)
            pl.BlockSpec((tile_n, c_max + 2), lambda i: (i, 0)),      # packed per-node scalars
            pl.BlockSpec((F, H), lambda i: (0, 0)),                   # wn_t
            pl.BlockSpec((1, H), lambda i: (0, 0)),                   # bn
            pl.BlockSpec((F, H), lambda i: (0, 0)),                   # wc_t
            pl.BlockSpec((1, H), lambda i: (0, 0)),                   # bc
            pl.BlockSpec((H, O), lambda i: (0, 0)),                   # wu_t
            pl.BlockSpec((1, O), lambda i: (0, 0)),                   # bu
            pl.BlockSpec((O, O), lambda i: (0, 0)),                   # base_w_t
            pl.BlockSpec((N_BASIS, O, O), lambda i: (0, 0, 0)),       # scaled spline weights
        ],
        out_specs=pl.BlockSpec((tile_n, O), lambda i: (i, 0)),
        compiler_params=pltpu.CompilerParams(
            dimension_semantics=("parallel",)),   # node-tile axis shards across v7x TCs
        cost_estimate=pl.CostEstimate(flops=flops,
                                      transcendentals=transcendentals,
                                      bytes_accessed=int(bytes_accessed)),
    )(x_f32, ctx, wpack, wn_p, bn_p, wc_p, bc_p, wu_p, bu_p, bw_p, sw_p)
    return out[:N, :O]


def init_params(key, num_features, hidden_dim, output_dim):
    ks = jax.random.split(key, 9)
    wn = 0.1 * jax.random.normal(ks[0], (hidden_dim, num_features), jnp.float32)
    bn = 0.1 * jax.random.normal(ks[1], (hidden_dim,), jnp.float32)
    wc = 0.1 * jax.random.normal(ks[2], (hidden_dim, num_features), jnp.float32)
    bc = 0.1 * jax.random.normal(ks[3], (hidden_dim,), jnp.float32)
    wu = 0.1 * jax.random.normal(ks[4], (output_dim, hidden_dim), jnp.float32)
    bu = 0.1 * jax.random.normal(ks[5], (output_dim,), jnp.float32)
    base_w = 0.1 * jax.random.normal(ks[6], (output_dim, output_dim), jnp.float32)
    spline_w = 0.1 * jax.random.normal(ks[7], (output_dim, output_dim, N_BASIS), jnp.float32)
    spline_scaler = 1.0 + 0.1 * jax.random.normal(ks[8], (output_dim, output_dim), jnp.float32)
    scaled_spline_w = spline_w * spline_scaler[:, :, None]   # efficient-kan scaled_spline_weight
    return dict(
        # torch-orientation copies (for the pure-JAX reference)
        wn=wn, bn_v=bn, wc=wc, bc_v=bc, wu=wu, bu_v=bu,
        base_w=base_w, scaled_spline_w=scaled_spline_w,
        # kernel-packed orientation (in, out)
        wn_t=wn.T, bn=bn.reshape(1, -1),
        wc_t=wc.T, bc=bc.reshape(1, -1),
        wu_t=wu.T, bu=bu.reshape(1, -1),
        base_w_t=base_w.T,
        spline_w_packed=jnp.transpose(scaled_spline_w, (2, 1, 0)),  # (N_BASIS, in, out)
    )


def reference_forward(x, context_map, attention_weights_map, params):
    """Pure-JAX mirror of the PyTorch per-node loop (Cox-de Boor spline, exact mean)."""
    outs = []
    for n in range(x.shape[0]):
        ctxs = context_map.get(n, [])
        if len(ctxs) > 0:
            cs = jnp.stack(ctxs)                                            # (c, F)
            aw = jnp.asarray(attention_weights_map[n], jnp.float32).reshape(-1, 1)
            xt = x[n:n + 1] @ params["wn"].T + params["bn_v"]
            ct = cs @ params["wc"].T + params["bc_v"]
            agg = jnp.mean(ct * aw, axis=0)
            upd = (xt + agg) @ params["wu"].T + params["bu_v"]              # (1, O)
            base = jax.nn.silu(upd) @ params["base_w"].T
            B = jnp.stack(_bspline_bases(upd), axis=-1)                     # (1, O, N_BASIS)
            O = upd.shape[1]
            spl = B.reshape(1, -1) @ params["scaled_spline_w"].reshape(O, -1).T
            outs.append((base + spl)[0])
        else:
            outs.append(x[n])
    return jnp.stack(outs)


if __name__ == "__main__":
    N, F, H, O, C_MAX = 8, 32, 32, 32, 4      # num_features == output_dim (passthrough branch)
    key = jax.random.PRNGKey(0)
    k_x, k_ctx, k_attn, k_params = jax.random.split(key, 4)
    x = jax.random.normal(k_x, (N, F), jnp.float32)
    contexts = jax.random.normal(k_ctx, (N, C_MAX, F), jnp.float32)
    attn = jax.random.uniform(k_attn, (N, C_MAX), jnp.float32)
    counts = jnp.array([2, 0, 4, 1, 3, 0, 2, 4], dtype=jnp.int32)
    params = init_params(k_params, F, H, O)

    # f32 kernel run: strict check against the pure-JAX per-node reference
    out = node_embedding_layer(x, contexts, attn, counts, params, c_max=C_MAX)
    out = jax.block_until_ready(out)

    # rebuild the dict-of-lists inputs exactly like the PyTorch module expects and compare
    context_map, attention_weights_map = {}, {}
    for n in range(N):
        c = int(counts[n])
        if c > 0:
            context_map[n] = [contexts[n, i] for i in range(c)]
            attention_weights_map[n] = [float(attn[n, i]) for i in range(c)]
    ref = reference_forward(x, context_map, attention_weights_map, params)
    np.testing.assert_allclose(np.asarray(out), np.asarray(ref), rtol=2e-3, atol=2e-3)

    # bf16 contexts/MXU run (f32 accumulation, exact f32 passthrough) — loose tolerance
    out_bf16 = node_embedding_layer(x, contexts, attn, counts, params,
                                    c_max=C_MAX, compute_dtype=jnp.bfloat16)
    out_bf16 = jax.block_until_ready(out_bf16)
    np.testing.assert_allclose(np.asarray(out_bf16), np.asarray(ref), rtol=1e-1, atol=1e-1)

    print("KERNEL_OK")
</pallas_src>

<mosaic_0001>
module attributes {stable_mosaic.version = 11 : i64} {
  func.func @node_embedding_kernel(%arg0: i32, %arg1: memref<8x32xf32, #tpu.memory_space<vmem>>, %arg2: memref<8x4x32xf32, #tpu.memory_space<vmem>>, %arg3: memref<8x6xf32, #tpu.memory_space<vmem>>, %arg4: memref<32x32xf32, #tpu.memory_space<vmem>>, %arg5: memref<1x32xf32, #tpu.memory_space<vmem>>, %arg6: memref<32x32xf32, #tpu.memory_space<vmem>>, %arg7: memref<1x32xf32, #tpu.memory_space<vmem>>, %arg8: memref<32x32xf32, #tpu.memory_space<vmem>>, %arg9: memref<1x32xf32, #tpu.memory_space<vmem>>, %arg10: memref<32x32xf32, #tpu.memory_space<vmem>>, %arg11: memref<5x32x32xf32, #tpu.memory_space<vmem>>, %arg12: memref<8x32xf32, #tpu.memory_space<vmem>>) attributes {dimension_semantics = [#tpu.dimension_semantics<parallel>], iteration_bounds = array<i64: 1>, scalar_prefetch = 0 : i64, scratch_operands = 0 : i64, tpu.core_type = #tpu.core_type<tc>, window_params = [{transform_indices = @transform_0, window_bounds = array<i64: 8, 32>}, {transform_indices = @transform_1, window_bounds = array<i64: 8, 4, 32>}, {transform_indices = @transform_2, window_bounds = array<i64: 8, 6>}, {pipeline_mode = #tpu.pipeline_mode<synchronous>, transform_indices = @transform_3, window_bounds = array<i64: 32, 32>}, {pipeline_mode = #tpu.pipeline_mode<synchronous>, transform_indices = @transform_4, window_bounds = array<i64: 1, 32>}, {pipeline_mode = #tpu.pipeline_mode<synchronous>, transform_indices = @transform_5, window_bounds = array<i64: 32, 32>}, {pipeline_mode = #tpu.pipeline_mode<synchronous>, transform_indices = @transform_6, window_bounds = array<i64: 1, 32>}, {pipeline_mode = #tpu.pipeline_mode<synchronous>, transform_indices = @transform_7, window_bounds = array<i64: 32, 32>}, {pipeline_mode = #tpu.pipeline_mode<synchronous>, transform_indices = @transform_8, window_bounds = array<i64: 1, 32>}, {pipeline_mode = #tpu.pipeline_mode<synchronous>, transform_indices = @transform_9, window_bounds = array<i64: 32, 32>}, {pipeline_mode = #tpu.pipeline_mode<synchronous>, transform_indices = @transform_10, window_bounds = array<i64: 5, 32, 32>}, {transform_indices = @transform_11, window_bounds = array<i64: 8, 32>}]} {
    %c0 = arith.constant 0 : index
    %c0_0 = arith.constant 0 : index
    %0 = vector.load %arg1[%c0, %c0_0] : memref<8x32xf32, #tpu.memory_space<vmem>>, vector<8x32xf32>
    %c0_1 = arith.constant 0 : index
    %c0_2 = arith.constant 0 : index
    %1 = vector.load %arg3[%c0_1, %c0_2] : memref<8x6xf32, #tpu.memory_space<vmem>>, vector<8x6xf32>
    %2 = vector.extract_strided_slice %1 {offsets = [0, 0], sizes = [8, 4], strides = [1, 1]} : vector<8x6xf32> to vector<8x4xf32>
    %3 = vector.extract_strided_slice %1 {offsets = [0, 4], sizes = [8, 1], strides = [1, 1]} : vector<8x6xf32> to vector<8x1xf32>
    %4 = vector.extract_strided_slice %1 {offsets = [0, 5], sizes = [8, 1], strides = [1, 1]} : vector<8x6xf32> to vector<8x1xf32>
    %c0_3 = arith.constant 0 : index
    %c0_4 = arith.constant 0 : index
    %c0_5 = arith.constant 0 : index
    %5 = vector.load %arg2[%c0_3, %c0_4, %c0_5] : memref<8x4x32xf32, #tpu.memory_space<vmem>>, vector<8x4x32xf32>
    %6 = vector.shape_cast %2 : vector<8x4xf32> to vector<8x4x1xf32>
    %7 = vector.broadcast %6 : vector<8x4x1xf32> to vector<8x4x32xf32>
    %8 = arith.mulf %5, %7 : vector<8x4x32xf32>
    %cst = arith.constant dense<0.000000e+00> : vector<8x32xf32>
    %9 = vector.multi_reduction <add>, %8, %cst [1] : vector<8x4x32xf32> to vector<8x32xf32>
    %c0_6 = arith.constant 0 : index
    %c0_7 = arith.constant 0 : index
    %10 = vector.load %arg4[%c0_6, %c0_7] : memref<32x32xf32, #tpu.memory_space<vmem>>, vector<32x32xf32>
    %cst_8 = arith.constant dense<0.000000e+00> : vector<8x32xf32>
    %11 = tpu.matmul %0, %10, %cst_8 {dimension_numbers = #tpu.dot_dimension_numbers<[1], [0], [0], [1], [0, 0, 1, 1], [], []>} : vector<8x32xf32>, vector<32x32xf32>, vector<8x32xf32> -> vector<8x32xf32>
    %c0_9 = arith.constant 0 : index
    %c0_10 = arith.constant 0 : index
    %12 = vector.load %arg5[%c0_9, %c0_10] : memref<1x32xf32, #tpu.memory_space<vmem>>, vector<1x32xf32>
    %13 = vector.broadcast %12 : vector<1x32xf32> to vector<8x32xf32>
    %14 = arith.addf %11, %13 : vector<8x32xf32>
    %c0_11 = arith.constant 0 : index
    %c0_12 = arith.constant 0 : index
    %15 = vector.load %arg6[%c0_11, %c0_12] : memref<32x32xf32, #tpu.memory_space<vmem>>, vector<32x32xf32>
    %cst_13 = arith.constant dense<0.000000e+00> : vector<8x32xf32>
    %16 = tpu.matmul %9, %15, %cst_13 {dimension_numbers = #tpu.dot_dimension_numbers<[1], [0], [0], [1], [0, 0, 1, 1], [], []>} : vector<8x32xf32>, vector<32x32xf32>, vector<8x32xf32> -> vector<8x32xf32>
    %c0_14 = arith.constant 0 : index
    %c0_15 = arith.constant 0 : index
    %17 = vector.load %arg7[%c0_14, %c0_15] : memref<1x32xf32, #tpu.memory_space<vmem>>, vector<1x32xf32>
    %18 = vector.broadcast %3 : vector<8x1xf32> to vector<8x32xf32>
    %19 = vector.broadcast %17 : vector<1x32xf32> to vector<8x32xf32>
    %20 = arith.mulf %18, %19 : vector<8x32xf32>
    %21 = arith.addf %16, %20 : vector<8x32xf32>
    %22 = arith.addf %14, %21 : vector<8x32xf32>
    %c0_16 = arith.constant 0 : index
    %c0_17 = arith.constant 0 : index
    %23 = vector.load %arg8[%c0_16, %c0_17] : memref<32x32xf32, #tpu.memory_space<vmem>>, vector<32x32xf32>
    %cst_18 = arith.constant dense<0.000000e+00> : vector<8x32xf32>
    %24 = tpu.matmul %22, %23, %cst_18 {dimension_numbers = #tpu.dot_dimension_numbers<[1], [0], [0], [1], [0, 0, 1, 1], [], []>} : vector<8x32xf32>, vector<32x32xf32>, vector<8x32xf32> -> vector<8x32xf32>
    %c0_19 = arith.constant 0 : index
    %c0_20 = arith.constant 0 : index
    %25 = vector.load %arg9[%c0_19, %c0_20] : memref<1x32xf32, #tpu.memory_space<vmem>>, vector<1x32xf32>
    %26 = vector.broadcast %25 : vector<1x32xf32> to vector<8x32xf32>
    %27 = arith.addf %24, %26 : vector<8x32xf32>
    %28 = arith.negf %27 : vector<8x32xf32>
    %29 = math.exp %28 : vector<8x32xf32>
    %cst_21 = arith.constant 1.000000e+00 : f32
    %30 = vector.broadcast %cst_21 : f32 to vector<8x32xf32>
    %31 = arith.addf %30, %29 : vector<8x32xf32>
    %32 = arith.divf %30, %31 : vector<8x32xf32>
    %33 = arith.mulf %27, %32 : vector<8x32xf32>
    %c0_22 = arith.constant 0 : index
    %c0_23 = arith.constant 0 : index
    %34 = vector.load %arg10[%c0_22, %c0_23] : memref<32x32xf32, #tpu.memory_space<vmem>>, vector<32x32xf32>
    %cst_24 = arith.constant dense<0.000000e+00> : vector<8x32xf32>
    %35 = tpu.matmul %33, %34, %cst_24 {dimension_numbers = #tpu.dot_dimension_numbers<[1], [0], [0], [1], [0, 0, 1, 1], [], []>} : vector<8x32xf32>, vector<32x32xf32>, vector<8x32xf32> -> vector<8x32xf32>
    %cst_25 = arith.constant -2.33333325 : f32
    %36 = vector.broadcast %cst_25 : f32 to vector<8x32xf32>
    %37 = arith.subf %27, %36 : vector<8x32xf32>
    %cst_26 = arith.constant 1.500000e+00 : f32
    %38 = vector.broadcast %cst_26 : f32 to vector<8x32xf32>
    %39 = arith.mulf %37, %38 : vector<8x32xf32>
    %40 = math.floor %39 : vector<8x32xf32>
    %41 = arith.subf %39, %40 : vector<8x32xf32>
    %cst_27 = arith.constant 5.000000e-01 : f32
    %42 = vector.broadcast %cst_27 : f32 to vector<8x32xf32>
    %43 = arith.mulf %42, %41 : vector<8x32xf32>
    %44 = arith.mulf %43, %41 : vector<8x32xf32>
    %cst_28 = arith.constant 1.000000e+00 : f32
    %45 = vector.broadcast %cst_28 : f32 to vector<8x32xf32>
    %46 = arith.subf %45, %41 : vector<8x32xf32>
    %47 = arith.mulf %41, %46 : vector<8x32xf32>
    %cst_29 = arith.constant 5.000000e-01 : f32
    %48 = vector.broadcast %cst_29 : f32 to vector<8x32xf32>
    %49 = arith.addf %48, %47 : vector<8x32xf32>
    %cst_30 = arith.constant 1.000000e+00 : f32
    %50 = vector.broadcast %cst_30 : f32 to vector<8x32xf32>
    %51 = arith.subf %50, %41 : vector<8x32xf32>
    %cst_31 = arith.constant 5.000000e-01 : f32
    %52 = vector.broadcast %cst_31 : f32 to vector<8x32xf32>
    %53 = arith.mulf %52, %51 : vector<8x32xf32>
    %cst_32 = arith.constant 1.000000e+00 : f32
    %54 = vector.broadcast %cst_32 : f32 to vector<8x32xf32>
    %55 = arith.subf %54, %41 : vector<8x32xf32>
    %56 = arith.mulf %53, %55 : vector<8x32xf32>
    %cst_33 = arith.constant 0.000000e+00 : f32
    %57 = vector.broadcast %cst_33 : f32 to vector<8x32xf32>
    %58 = arith.subf %40, %57 : vector<8x32xf32>
    %cst_34 = arith.constant 0.000000e+00 : f32
    %59 = vector.broadcast %cst_34 : f32 to vector<8x32xf32>
    %60 = arith.cmpf oeq, %58, %59 : vector<8x32xf32>
    %cst_35 = arith.constant 1.000000e+00 : f32
    %61 = vector.broadcast %cst_35 : f32 to vector<8x32xf32>
    %62 = arith.cmpf oeq, %58, %61 : vector<8x32xf32>
    %cst_36 = arith.constant 2.000000e+00 : f32
    %63 = vector.broadcast %cst_36 : f32 to vector<8x32xf32>
    %64 = arith.cmpf oeq, %58, %63 : vector<8x32xf32>
    %cst_37 = arith.constant 0.000000e+00 : f32
    %65 = vector.broadcast %cst_37 : f32 to vector<8x32xf32>
    %66 = arith.select %64, %56, %65 : vector<8x32xi1>, vector<8x32xf32>
    %67 = arith.select %62, %49, %66 : vector<8x32xi1>, vector<8x32xf32>
    %68 = arith.select %60, %44, %67 : vector<8x32xi1>, vector<8x32xf32>
    %c0_38 = arith.constant 0 : index
    %c0_39 = arith.constant 0 : index
    %c0_40 = arith.constant 0 : index
    %69 = vector.load %arg11[%c0_38, %c0_39, %c0_40] : memref<5x32x32xf32, #tpu.memory_space<vmem>>, vector<1x32x32xf32>
    %70 = vector.shape_cast %69 : vector<1x32x32xf32> to vector<32x32xf32>
    %cst_41 = arith.constant dense<0.000000e+00> : vector<8x32xf32>
    %71 = tpu.matmul %68, %70, %cst_41 {dimension_numbers = #tpu.dot_dimension_numbers<[1], [0], [0], [1], [0, 0, 1, 1], [], []>} : vector<8x32xf32>, vector<32x32xf32>, vector<8x32xf32> -> vector<8x32xf32>
    %72 = arith.addf %35, %71 : vector<8x32xf32>
    %cst_42 = arith.constant 1.000000e+00 : f32
    %73 = vector.broadcast %cst_42 : f32 to vector<8x32xf32>
    %74 = arith.subf %40, %73 : vector<8x32xf32>
    %cst_43 = arith.constant 0.000000e+00 : f32
    %75 = vector.broadcast %cst_43 : f32 to vector<8x32xf32>
    %76 = arith.cmpf oeq, %74, %75 : vector<8x32xf32>
    %cst_44 = arith.constant 1.000000e+00 : f32
    %77 = vector.broadcast %cst_44 : f32 to vector<8x32xf32>
    %78 = arith.cmpf oeq, %74, %77 : vector<8x32xf32>
    %cst_45 = arith.constant 2.000000e+00 : f32
    %79 = vector.broadcast %cst_45 : f32 to vector<8x32xf32>
    %80 = arith.cmpf oeq, %74, %79 : vector<8x32xf32>
    %cst_46 = arith.constant 0.000000e+00 : f32
    %81 = vector.broadcast %cst_46 : f32 to vector<8x32xf32>
    %82 = arith.select %80, %56, %81 : vector<8x32xi1>, vector<8x32xf32>
    %83 = arith.select %78, %49, %82 : vector<8x32xi1>, vector<8x32xf32>
    %84 = arith.select %76, %44, %83 : vector<8x32xi1>, vector<8x32xf32>
    %c1 = arith.constant 1 : index
    %c0_47 = arith.constant 0 : index
    %c0_48 = arith.constant 0 : index
    %85 = vector.load %arg11[%c1, %c0_47, %c0_48] : memref<5x32x32xf32, #tpu.memory_space<vmem>>, vector<1x32x32xf32>
    %86 = vector.shape_cast %85 : vector<1x32x32xf32> to vector<32x32xf32>
    %cst_49 = arith.constant dense<0.000000e+00> : vector<8x32xf32>
    %87 = tpu.matmul %84, %86, %cst_49 {dimension_numbers = #tpu.dot_dimension_numbers<[1], [0], [0], [1], [0, 0, 1, 1], [], []>} : vector<8x32xf32>, vector<32x32xf32>, vector<8x32xf32> -> vector<8x32xf32>
    %88 = arith.addf %72, %87 : vector<8x32xf32>
    %cst_50 = arith.constant 2.000000e+00 : f32
    %89 = vector.broadcast %cst_50 : f32 to vector<8x32xf32>
    %90 = arith.subf %40, %89 : vector<8x32xf32>
    %cst_51 = arith.constant 0.000000e+00 : f32
    %91 = vector.broadcast %cst_51 : f32 to vector<8x32xf32>
    %92 = arith.cmpf oeq, %90, %91 : vector<8x32xf32>
    %cst_52 = arith.constant 1.000000e+00 : f32
    %93 = vector.broadcast %cst_52 : f32 to vector<8x32xf32>
    %94 = arith.cmpf oeq, %90, %93 : vector<8x32xf32>
    %cst_53 = arith.constant 2.000000e+00 : f32
    %95 = vector.broadcast %cst_53 : f32 to vector<8x32xf32>
    %96 = arith.cmpf oeq, %90, %95 : vector<8x32xf32>
    %cst_54 = arith.constant 0.000000e+00 : f32
    %97 = vector.broadcast %cst_54 : f32 to vector<8x32xf32>
    %98 = arith.select %96, %56, %97 : vector<8x32xi1>, vector<8x32xf32>
    %99 = arith.select %94, %49, %98 : vector<8x32xi1>, vector<8x32xf32>
    %100 = arith.select %92, %44, %99 : vector<8x32xi1>, vector<8x32xf32>
    %c2 = arith.constant 2 : index
    %c0_55 = arith.constant 0 : index
    %c0_56 = arith.constant 0 : index
    %101 = vector.load %arg11[%c2, %c0_55, %c0_56] : memref<5x32x32xf32, #tpu.memory_space<vmem>>, vector<1x32x32xf32>
    %102 = vector.shape_cast %101 : vector<1x32x32xf32> to vector<32x32xf32>
    %cst_57 = arith.constant dense<0.000000e+00> : vector<8x32xf32>
    %103 = tpu.matmul %100, %102, %cst_57 {dimension_numbers = #tpu.dot_dimension_numbers<[1], [0], [0], [1], [0, 0, 1, 1], [], []>} : vector<8x32xf32>, vector<32x32xf32>, vector<8x32xf32> -> vector<8x32xf32>
    %104 = arith.addf %88, %103 : vector<8x32xf32>
    %cst_58 = arith.constant 3.000000e+00 : f32
    %105 = vector.broadcast %cst_58 : f32 to vector<8x32xf32>
    %106 = arith.subf %40, %105 : vector<8x32xf32>
    %cst_59 = arith.constant 0.000000e+00 : f32
    %107 = vector.broadcast %cst_59 : f32 to vector<8x32xf32>
    %108 = arith.cmpf oeq, %106, %107 : vector<8x32xf32>
    %cst_60 = arith.constant 1.000000e+00 : f32
    %109 = vector.broadcast %cst_60 : f32 to vector<8x32xf32>
    %110 = arith.cmpf oeq, %106, %109 : vector<8x32xf32>
    %cst_61 = arith.constant 2.000000e+00 : f32
    %111 = vector.broadcast %cst_61 : f32 to vector<8x32xf32>
    %112 = arith.cmpf oeq, %106, %111 : vector<8x32xf32>
    %cst_62 = arith.constant 0.000000e+00 : f32
    %113 = vector.broadcast %cst_62 : f32 to vector<8x32xf32>
    %114 = arith.select %112, %56, %113 : vector<8x32xi1>, vector<8x32xf32>
    %115 = arith.select %110, %49, %114 : vector<8x32xi1>, vector<8x32xf32>
    %116 = arith.select %108, %44, %115 : vector<8x32xi1>, vector<8x32xf32>
    %c3 = arith.constant 3 : index
    %c0_63 = arith.constant 0 : index
    %c0_64 = arith.constant 0 : index
    %117 = vector.load %arg11[%c3, %c0_63, %c0_64] : memref<5x32x32xf32, #tpu.memory_space<vmem>>, vector<1x32x32xf32>
    %118 = vector.shape_cast %117 : vector<1x32x32xf32> to vector<32x32xf32>
    %cst_65 = arith.constant dense<0.000000e+00> : vector<8x32xf32>
    %119 = tpu.matmul %116, %118, %cst_65 {dimension_numbers = #tpu.dot_dimension_numbers<[1], [0], [0], [1], [0, 0, 1, 1], [], []>} : vector<8x32xf32>, vector<32x32xf32>, vector<8x32xf32> -> vector<8x32xf32>
    %120 = arith.addf %104, %119 : vector<8x32xf32>
    %cst_66 = arith.constant 4.000000e+00 : f32
    %121 = vector.broadcast %cst_66 : f32 to vector<8x32xf32>
    %122 = arith.subf %40, %121 : vector<8x32xf32>
    %cst_67 = arith.constant 0.000000e+00 : f32
    %123 = vector.broadcast %cst_67 : f32 to vector<8x32xf32>
    %124 = arith.cmpf oeq, %122, %123 : vector<8x32xf32>
    %cst_68 = arith.constant 1.000000e+00 : f32
    %125 = vector.broadcast %cst_68 : f32 to vector<8x32xf32>
    %126 = arith.cmpf oeq, %122, %125 : vector<8x32xf32>
    %cst_69 = arith.constant 2.000000e+00 : f32
    %127 = vector.broadcast %cst_69 : f32 to vector<8x32xf32>
    %128 = arith.cmpf oeq, %122, %127 : vector<8x32xf32>
    %cst_70 = arith.constant 0.000000e+00 : f32
    %129 = vector.broadcast %cst_70 : f32 to vector<8x32xf32>
    %130 = arith.select %128, %56, %129 : vector<8x32xi1>, vector<8x32xf32>
    %131 = arith.select %126, %49, %130 : vector<8x32xi1>, vector<8x32xf32>
    %132 = arith.select %124, %44, %131 : vector<8x32xi1>, vector<8x32xf32>
    %c4 = arith.constant 4 : index
    %c0_71 = arith.constant 0 : index
    %c0_72 = arith.constant 0 : index
    %133 = vector.load %arg11[%c4, %c0_71, %c0_72] : memref<5x32x32xf32, #tpu.memory_space<vmem>>, vector<1x32x32xf32>
    %134 = vector.shape_cast %133 : vector<1x32x32xf32> to vector<32x32xf32>
    %cst_73 = arith.constant dense<0.000000e+00> : vector<8x32xf32>
    %135 = tpu.matmul %132, %134, %cst_73 {dimension_numbers = #tpu.dot_dimension_numbers<[1], [0], [0], [1], [0, 0, 1, 1], [], []>} : vector<8x32xf32>, vector<32x32xf32>, vector<8x32xf32> -> vector<8x32xf32>
    %136 = arith.addf %120, %135 : vector<8x32xf32>
    %cst_74 = arith.constant 0.000000e+00 : f32
    %137 = vector.broadcast %cst_74 : f32 to vector<8x1xf32>
    %138 = arith.cmpf ogt, %4, %137 : vector<8x1xf32>
    %139 = vector.shape_cast %138 : vector<8x1xi1> to vector<8x1xi1>
    %140 = vector.broadcast %139 : vector<8x1xi1> to vector<8x32xi1>
    %141 = arith.select %140, %136, %0 : vector<8x32xi1>, vector<8x32xf32>
    %c0_75 = arith.constant 0 : index
    %c0_76 = arith.constant 0 : index
    %142 = vector.load %arg12[%c0_75, %c0_76] : memref<8x32xf32, #tpu.memory_space<vmem>>, vector<8x32xf32>
    tpu.vector_store %arg12[%c0_75, %c0_76], %141 {strides = array<i32>} : memref<8x32xf32, #tpu.memory_space<vmem>>, vector<8x32xf32>,
    return
  }
  func.func @transform_0(%arg0: i32) -> (i32, i32) {
    %c0_i32 = arith.constant 0 : i32
    %c0_i32_0 = arith.constant 0 : i32
    return %arg0, %c0_i32 : i32, i32
  }
  func.func @transform_1(%arg0: i32) -> (i32, i32, i32) {
    %c0_i32 = arith.constant 0 : i32
    %c0_i32_0 = arith.constant 0 : i32
    %c0_i32_1 = arith.constant 0 : i32
    return %arg0, %c0_i32, %c0_i32_0 : i32, i32, i32
  }
  func.func @transform_2(%arg0: i32) -> (i32, i32) {
    %c0_i32 = arith.constant 0 : i32
    %c0_i32_0 = arith.constant 0 : i32
    return %arg0, %c0_i32 : i32, i32
  }
  func.func @transform_3(%arg0: i32) -> (i32, i32) {
    %c0_i32 = arith.constant 0 : i32
    %c0_i32_0 = arith.constant 0 : i32
    %c0_i32_1 = arith.constant 0 : i32
    return %c0_i32, %c0_i32_0 : i32, i32
  }
  func.func @transform_4(%arg0: i32) -> (i32, i32) {
    %c0_i32 = arith.constant 0 : i32
    %c0_i32_0 = arith.constant 0 : i32
    %c0_i32_1 = arith.constant 0 : i32
    return %c0_i32, %c0_i32_0 : i32, i32
  }
  func.func @transform_5(%arg0: i32) -> (i32, i32) {
    %c0_i32 = arith.constant 0 : i32
    %c0_i32_0 = arith.constant 0 : i32
    %c0_i32_1 = arith.constant 0 : i32
    return %c0_i32, %c0_i32_0 : i32, i32
  }
  func.func @transform_6(%arg0: i32) -> (i32, i32) {
    %c0_i32 = arith.constant 0 : i32
    %c0_i32_0 = arith.constant 0 : i32
    %c0_i32_1 = arith.constant 0 : i32
    return %c0_i32, %c0_i32_0 : i32, i32
  }
  func.func @transform_7(%arg0: i32) -> (i32, i32) {
    %c0_i32 = arith.constant 0 : i32
    %c0_i32_0 = arith.constant 0 : i32
    %c0_i32_1 = arith.constant 0 : i32
    return %c0_i32, %c0_i32_0 : i32, i32
  }
  func.func @transform_8(%arg0: i32) -> (i32, i32) {
    %c0_i32 = arith.constant 0 : i32
    %c0_i32_0 = arith.constant 0 : i32
    %c0_i32_1 = arith.constant 0 : i32
    return %c0_i32, %c0_i32_0 : i32, i32
  }
  func.func @transform_9(%arg0: i32) -> (i32, i32) {
    %c0_i32 = arith.constant 0 : i32
    %c0_i32_0 = arith.constant 0 : i32
    %c0_i32_1 = arith.constant 0 : i32
    return %c0_i32, %c0_i32_0 : i32, i32
  }
  func.func @transform_10(%arg0: i32) -> (i32, i32, i32) {
    %c0_i32 = arith.constant 0 : i32
    %c0_i32_0 = arith.constant 0 : i32
    %c0_i32_1 = arith.constant 0 : i32
    %c0_i32_2 = arith.constant 0 : i32
    return %c0_i32, %c0_i32_0, %c0_i32_1 : i32, i32, i32
  }
  func.func @transform_11(%arg0: i32) -> (i32, i32) {
    %c0_i32 = arith.constant 0 : i32
    %c0_i32_0 = arith.constant 0 : i32
    return %arg0, %c0_i32 : i32, i32
  }
}

</mosaic_0001>

<bundles_post_ra>
// kernel: tpu_custom_call.1
= control target key start
LH: loop header
LB: loop body
LE: loop exit
PB: predicated region body
PF: predicated region fallthrough
CT: control target
= control target key end

     0   :  { %16 = vsyncpa [#allocation3], 0  ;;  %s1126_s0 = inlined_call_operand.hbm [shape: f32[8,32], index: 0, kind: input, shape index: {}]   ;;  %s1127_s1 = inlined_call_operand.hbm [shape: f32[8,4,32], index: 1, kind: input, shape index: {}]   ;;  %s1128_s2 = inlined_call_operand.hbm [shape: f32[8,6], index: 2, kind: input, shape index: {}]   ;;  %s1129_s3 = inlined_call_operand.hbm [shape: f32[32,32], index: 3, kind: input, shape index: {}]   ;;  %s1130_s4 = inlined_call_operand.vmem [shape: f32[1,32], index: 4, kind: input, shape index: {}]   ;;  %s1131_s5 = inlined_call_operand.hbm [shape: f32[32,32], index: 5, kind: input, shape index: {}]   ;;  %s1132_s6 = inlined_call_operand.vmem [shape: f32[1,32], index: 6, kind: input, shape index: {}]   ;;  %s1133_s7 = inlined_call_operand.hbm [shape: f32[32,32], index: 7, kind: input, shape index: {}]   ;;  %s1134_s8 = inlined_call_operand.vmem [shape: f32[1,32], index: 8, kind: input, shape index: {}]   ;;  %s1135_s9 = inlined_call_operand.hbm [shape: f32[32,32], index: 9, kind: input, shape index: {}]   ;;  %s1136_s10 = inlined_call_operand.hbm [shape: f32[5,32,32], index: 10, kind: input, shape index: {}]   ;;  %s1137_s11 = inlined_call_operand.hbm [shape: f32[8,32], index: 11, kind: output, shape index: {}]  }
   0x1   :  { %17 = vsyncpa [#allocation6], 0 }
   0x2   :  { %18 = vsyncpa [#allocation9], 0 }
   0x3   :  { %19 = vsyncpa [#allocation12], 0 }
   0x4   :  { %20 = vsyncpa [#allocation15], 0  ;;  %s37_s19 = sshll.u32 %s1127_s1, 4  ;;  %s38_s19 = int_to_ptr.hbm [resolvable:$true] %s37_s19 }
   0x5   :  { %21 = vsyncpa [#allocation4], 0  ;;  %s948_s20 = smov [#allocation5]   ;;  %s61_s24 = sshll.u32 %s1129_s3, 4  ;;  %s62_s24 = int_to_ptr.hbm [resolvable:$true] %s61_s24 }
   0x6   :  { %s39_s21 = sshll.u32 %s948_s20, 4  ;;  %s949_s25 = smov 64   ;;  %s40_s21 = int_to_ptr.vmem [resolvable:$true] %s39_s21 }
   0x7   :  { %s950_s26 = smov 4   ;;  %s951_s27 = smov [#allocation8]  }
   0x8   :  { %45 = dma.hbm_to_vmem [thread:$0]  %s38_s19, 512, %s40_s21, [#allocation6], %s949_s25, %s949_s25, %s950_s26  }
   0x9   :  { %s63_s28 = sshll.u32 %s951_s27, 4  ;;  %s952_s29 = smov 128   ;;  %s64_s28 = int_to_ptr.vmem [resolvable:$true] %s63_s28 }
   0xa   :  { %s953_s30 = smov 8   ;;  %s91_s13 = sshll.u32 %s1133_s7, 4  ;;  %s92_s13 = int_to_ptr.hbm [resolvable:$true] %s91_s13 }
   0xb   :  { %69 = dma.hbm_to_vmem [thread:$0]  %s62_s24, 512, %s64_s28, [#allocation9], %s952_s29, %s952_s29, %s953_s30  }
   0xc   :  { %s954_s14 = smov [#allocation11]   ;;  %s27_s17 = sshll.u32 %s1126_s0, 4  ;;  %s28_s17 = int_to_ptr.hbm [resolvable:$true] %s27_s17 }
   0xd   :  { %s93_s3 = sshll.u32 %s954_s14, 4  ;;  %s955_s18 = smov [#allocation2]   ;;  %s94_s3 = int_to_ptr.vmem [resolvable:$true] %s93_s3 }
   0xe   :  { %99 = dma.hbm_to_vmem [thread:$0]  %s92_s13, 512, %s94_s3, [#allocation12], %s952_s29, %s952_s29, %s953_s30  }
   0xf   :  { %s29_s19 = sshll.u32 %s955_s18, 4  ;;  %s51_s22 = sshll.u32 %s1128_s2, 4  ;;  %s30_s19 = int_to_ptr.vmem [resolvable:$true] %s29_s19  ;;  %s52_s22 = int_to_ptr.hbm [resolvable:$true] %s51_s22 }
  0x10   :  { %32 = dma.hbm_to_vmem [thread:$0]  %s28_s17, 128, %s30_s19, [#allocation3]  }
  0x11   :  { %s76_s24 = sshll.u32 %s1131_s5, 4  ;;  %s956_s25 = smov [#allocation7]   ;;  %s77_s24 = int_to_ptr.hbm [resolvable:$true] %s76_s24 }
  0x12   :  { %s53_s0 = sshll.u32 %s956_s25, 4  ;;  %s957_s26 = smov [#allocation10]   ;;  %s54_s0 = int_to_ptr.vmem [resolvable:$true] %s53_s0 }
  0x13   :  { %56 = dma.hbm_to_vmem [thread:$0]  %s52_s22, 128, %s54_s0, [#allocation6]  }
  0x14   :  { %s78_s27 = sshll.u32 %s957_s26, 4  ;;  %s106_s12 = sshll.u32 %s1135_s9, 4  ;;  %s79_s27 = int_to_ptr.vmem [resolvable:$true] %s78_s27  ;;  %s107_s12 = int_to_ptr.hbm [resolvable:$true] %s106_s12 }
  0x15   :  { %84 = dma.hbm_to_vmem [thread:$0]  %s77_s24, 512, %s79_s27, [#allocation9], %s952_s29, %s952_s29, %s953_s30  }
  0x16   :  { %s119_s5 = sshll.u32 %s1136_s10, 4  ;;  %s958_s14 = smov [#allocation13]   ;;  %s120_s5 = int_to_ptr.hbm [resolvable:$true] %s119_s5 }
  0x17   :  { %s108_s3 = sshll.u32 %s958_s14, 4  ;;  %s959_s15 = smov [#allocation14]   ;;  %s109_s3 = int_to_ptr.vmem [resolvable:$true] %s108_s3 }
  0x18   :  { %114 = dma.hbm_to_vmem [thread:$0]  %s107_s12, 512, %s109_s3, [#allocation12], %s952_s29, %s952_s29, %s953_s30  }
  0x19   :  { %s121_s9 = sshll.u32 %s959_s15, 4  ;;  %s122_s9 = int_to_ptr.vmem [resolvable:$true] %s121_s9 }
  0x1a   :  { %127 = dma.hbm_to_vmem [thread:$0]  %s120_s5, 2560, %s122_s9, [#allocation15], %s952_s29, %s952_s29, %s953_s30  }
  0x1b   :  { %936 = dma.done.wait [#allocation3], 128  }
  0x1c   :  { %937 = vsyncadd [#allocation3], 4294967168 }
  0x1d   :  { %938 = dma.done.wait [#allocation6], 640  }
  0x1e   :  { %939 = vsyncadd [#allocation6], 4294966656 }
  0x1f   :  { %940 = dma.done.wait [#allocation9], 1024  }
  0x20   :  { %941 = vsyncadd [#allocation9], 4294966272 }
  0x21   :  { %942 = dma.done.wait [#allocation12], 1024  }
  0x22   :  { %943 = vsyncadd [#allocation12], 4294966272 }
  0x23   :  { %944 = dma.done.wait [#allocation15], 2560  }
  0x24   :  { %945 = vsyncadd [#allocation15], 4294964736  ;;  %v171_v0 = vlaneseq  ;;  %v1063_v2 = vld [vmem:[#allocation7] sm:$0xff]  ;;  %v166_v14 = vld [vmem:[#allocation5 + $0x10] sm:$0xf]  ;;  %vm234_vm0 = vcmask 257024  }
  0x25   :  { %v184_v3 = vperm.slane %v1063_v2, 2  ;;  %v170_v4 = vperm.slane %v1063_v2, 0  ;;  %v198_v5 = vperm.slane %v1063_v2, 4  ;;  %v191_v6 = vperm.slane %v1063_v2, 3  ;;  %v294_v12 = vld [vmem:[#allocation8 + $0x18] sm:$0xff]  ;;  %v293_v15 = vld [vmem:[#allocation8 + $0x10] sm:$0xff] }
  0x26   :  { %v172_v1 = vshrl.u32 %v171_v0, 7  ;;  %v177_v7 = vperm.slane %v1063_v2, 1  ;;  %v205_v8 = vperm.slane %v1063_v2, 5  ;;  %v219_v9 = vperm.slane %v1063_v2, 7  ;;  %v326_v13 = vld [vmem:[#allocation10 + $0x18] sm:$0xff]  ;;  %315 = vmatpush.msra.mxu0 %v294_v12  ;;  %v325_v16 = vld [vmem:[#allocation10 + $0x10] sm:$0xff] }
  0x27   :  { %v212_v10 = vperm.slane %v1063_v2, 6  ;;  %373 = vmatpush.msra.mxu1 %v326_v13  ;;  %v164_v17 = vld [vmem:[#allocation5 + $0x8] sm:$0xf]  ;;  %v162_v18 = vld [vmem:[#allocation5] sm:$0xf]  ;;  %v292_v20 = vld [vmem:[#allocation8 + $0x8] sm:$0xff] }
  0x28   :  { %709 = vset.pattern.permute.xlu1 %v172_v1  ;;  %708 = vset.pattern.permute.xlu0 %v172_v1  ;;  %v324_v21 = vld [vmem:[#allocation10 + $0x8] sm:$0xff]  ;;  %v291_v22 = vld [vmem:[#allocation8] sm:$0xff]  ;;  %v1073_v26 = vld [vmem:[#allocation2] sm:$0xff]  ;;  %vm299_vm1 = vcmask 261120   ;;  %v960_v36 = vmov 4   ;;  %vm345_vm2 = vcmask 1041409  }
  0x29   :  { %710 = vset.pattern.permute.xlu2 %v172_v1  ;;  %316 = vmatpush.msra.mxu0 %v293_v15  ;;  %v167_v23 = vld [vmem:[#allocation5 + $0x14] sm:$0xf]  ;;  %v323_v25 = vld [vmem:[#allocation10] sm:$0xff]  ;;  %v385_v33 = vld [vmem:[#allocation11 + $0x18] sm:$0xff]  ;;  %vm347_vm3 = vcmask 1042434   ;;  %vm349_vm4 = vcmask 1043459  }
  0x2a   :  { %374 = vmatpush.msra.mxu1 %v325_v16  ;;  %405 = vmatpush.msra.mxu2 %v385_v33  ;;  %v165_v42 = vld [vmem:[#allocation5 + $0xc] sm:$0xf]  ;;  %v163_v43 = vld [vmem:[#allocation5 + $0x4] sm:$0xf]  ;;  %v169_v62 = vld [vmem:[#allocation5 + $0x1c] sm:$0xf] }
  0x2b   :  { %317 = vmatpush.msra.mxu0 %v292_v20  ;;  %v168_v63 = vld [vmem:[#allocation5 + $0x18] sm:$0xf]  ;;  %vm351_vm5 = vcmask 1044484   ;;  %vm353_vm6 = vcmask 1045509   ;;  %vm355_vm7 = vcmask 1046534   ;;  %vm357_vm8 = vcmask 1047559  }
  0x2c   :  { %375 = vmatpush.msra.mxu1 %v324_v21  ;;  %s663_s20 = sshll.u32 %s1137_s11, 4  ;;  %s664_s20 = int_to_ptr.hbm [resolvable:$true] %s663_s20 }
  0x2d   :  { %318 = vmatpush.msra.mxu0 %v291_v22 }
  0x2e   :  { %376 = vmatpush.msra.mxu1 %v323_v25  ;;  %677 = vmatmul.msk.f32.vlgmr.msra.gmra.mxu0 %vm299_vm1, %v1073_v26 }
  0x30   :  { %189 = vperm.xlu1 %709, %v184_v3   ;;  %175 = vperm.xlu0 %708, %v170_v4  }
  0x31   :  { %203 = vperm.xlu2 %710, %v198_v5  }
  0x38   :  { %196 = vperm.xlu1 %709, %v191_v6   ;;  %182 = vperm.xlu0 %708, %v177_v7  }
  0x39   :  { %210 = vperm.xlu2 %710, %v205_v8  }
  0x40   :  { %224 = vperm.xlu1 %709, %v219_v9   ;;  %217 = vperm.xlu0 %708, %v212_v10  }
  0x41   :  { %711 = vset.pattern.permute.xlu2 %v960_v36 }
  0x42   :  { %330 = vperm.xlu2 %711, %v1063_v2  }
  0x8b   :  { %v204_v11 = vpop.permute.xlu2 %203 }
  0x8c   :  { %v230_v19 = vmul.f32 %v204_v11, %v166_v14 }
  0x8e   :  { %v263_v31 = vsel %vm234_vm0, %v230_v19, 0.0 }
  0x8f   :  { %v264_v39 = vrot.slane %v263_v31, 4 }
  0x91   :  { %v265_v47 = vadd.f32 %v264_v39, %v263_v31 }
  0x93   :  { %v211_v24 = vpop.permute.xlu2 %210  ;;  %v266_v57 = vrot.slane %v265_v47, 2 }
  0x94   :  { %v231_v32 = vmul.f32 %v211_v24, %v167_v23 }
  0x95   :  { %v267_v6 = vadd.f32 %v266_v57, %v265_v47  ;;  %v384_v47 = vld [vmem:[#allocation11 + $0x10] sm:$0xff] }
  0x96   :  { %v270_v41 = vsel %vm234_vm0, %v231_v32, 0.0  ;;  %406 = vmatpush.msra.mxu2 %v384_v47 }
  0x97   :  { %v271_v48 = vrot.slane %v270_v41, 4  ;;  %v268_v20 = vrot.slane %v267_v6, 1 }
  0x99   :  { %v272_v58 = vadd.f32 %v271_v48, %v270_v41  ;;  %v383_v48 = vld [vmem:[#allocation11 + $0x8] sm:$0xff] }
  0x9a   :  { %407 = vmatpush.msra.mxu2 %v383_v48 }
  0x9b   :  { %v273_v7 = vrot.slane %v272_v58, 2 }
  0x9d   :  { %v274_v21 = vadd.f32 %v273_v7, %v272_v58  ;;  %v548_v7 = vld [vmem:[#allocation14 + $0x40] sm:$0xff] }
  0x9f   :  { %v275_v32 = vrot.slane %v274_v21, 1 }
  0xa1   :  { %v276_v41 = vadd.f32 %v275_v32, %v274_v21 }
  0xa2   :  { %v190_v27 = vpop.permute.xlu1 %189  ;;  %v176_v28 = vpop.permute.xlu0 %175 }
  0xa3   :  { %v228_v29 = vmul.f32 %v190_v27, %v164_v17  ;;  %v226_v30 = vmul.f32 %v176_v28, %v162_v18 }
  0xa5   :  { %v249_v34 = vsel %vm234_vm0, %v228_v29, 0.0  ;;  %v235_v35 = vsel %vm234_vm0, %v226_v30, 0.0 }
  0xa6   :  { %v250_v37 = vrot.slane %v249_v34, 4  ;;  %v236_v38 = vrot.slane %v235_v35, 4 }
  0xa8   :  { %v237_v40 = vadd.f32 %v236_v38, %v235_v35  ;;  %v251_v44 = vadd.f32 %v250_v37, %v249_v34  ;;  %v269_v34 = vadd.f32 %v268_v20, %v267_v6  ;;  %v512_v6 = vld [vmem:[#allocation14 + $0x20] sm:$0xff] }
  0xaa   :  { %v197_v45 = vpop.permute.xlu1 %196  ;;  %v183_v46 = vpop.permute.xlu0 %182  ;;  %v238_v51 = vrot.slane %v237_v40, 2  ;;  %v252_v52 = vrot.slane %v251_v44, 2 }
  0xab   :  { %v229_v49 = vmul.f32 %v197_v45, %v165_v42  ;;  %v227_v50 = vmul.f32 %v183_v46, %v163_v43 }
  0xac   :  { %v239_v59 = vadd.f32 %v238_v51, %v237_v40  ;;  %v253_v0 = vadd.f32 %v252_v52, %v251_v44  ;;  %v331_v51 = vpop.permute.xlu2 %330  ;;  %v714_v52 = vld [vmem:[%s1130_s4] ss:$0 sm:$0xff] }
  0xad   :  { %v256_v53 = vsel %vm234_vm0, %v229_v49, 0.0  ;;  %v242_v54 = vsel %vm234_vm0, %v227_v50, 0.0  ;;  %v382_v49 = vld [vmem:[#allocation11] sm:$0xff]  ;;  %v713_v50 = vld [vmem:[%s1132_s6] ss:$0 sm:$0xff] }
  0xae   :  { %v257_v55 = vrot.slane %v256_v53, 4  ;;  %v243_v56 = vrot.slane %v242_v54, 4  ;;  %v240_v10 = vrot.slane %v239_v59, 1  ;;  %v254_v13 = vrot.slane %v253_v0, 1  ;;  %408 = vmatpush.msra.mxu2 %v382_v49 }
  0xb0   :  { %v258_v60 = vadd.f32 %v257_v55, %v256_v53  ;;  %v244_v61 = vadd.f32 %v243_v56, %v242_v54  ;;  %v241_v22 = vadd.f32 %v240_v10, %v239_v59  ;;  %v255_v27 = vadd.f32 %v254_v13, %v253_v0  ;;  %v320_v53 = vpop.f32.mrf.mxu0  ;;  %v457_v59 = vld [vmem:[#allocation14 + $0x18] sm:$0xff]  ;;  %v550_v0 = vld [vmem:[#allocation14 + $0x50] sm:$0xff]  ;;  %v585_v10 = vld [vmem:[#allocation14 + $0x68] sm:$0xff] }
  0xb1   :  { %v336_v54 = vmul.f32 %v713_v50, %v331_v51  ;;  %v321_v55 = vadd.f32 %v714_v52, %v320_v53  ;;  %473 = vmatpush.msra.mxu3 %v457_v59  ;;  %v584_v13 = vld [vmem:[#allocation14 + $0x60] sm:$0xff] }
  0xb2   :  { %v259_v1 = vrot.slane %v258_v60, 2  ;;  %v245_v3 = vrot.slane %v244_v61, 2  ;;  %v225_v4 = vpop.permute.xlu1 %224  ;;  %v218_v5 = vpop.permute.xlu0 %217 }
  0xb3   :  { %v233_v8 = vmul.f32 %v225_v4, %v169_v62  ;;  %v232_v9 = vmul.f32 %v218_v5, %v168_v63  ;;  %v456_v62 = vld [vmem:[#allocation14 + $0x10] sm:$0xff]  ;;  %v549_v4 = vld [vmem:[#allocation14 + $0x48] sm:$0xff]  ;;  %v454_v5 = vld [vmem:[#allocation14] sm:$0xff] }
  0xb4   :  { %v260_v11 = vadd.f32 %v259_v1, %v258_v60  ;;  %v246_v12 = vadd.f32 %v245_v3, %v244_v61  ;;  %v515_v60 = vld [vmem:[#allocation14 + $0x38] sm:$0xff]  ;;  %v514_v63 = vld [vmem:[#allocation14 + $0x30] sm:$0xff]  ;;  %474 = vmatpush.msra.mxu3 %v456_v62  ;;  %v455_v1 = vld [vmem:[#allocation14 + $0x8] sm:$0xff] }
  0xb5   :  { %v284_v14 = vsel %vm234_vm0, %v233_v8, 0.0  ;;  %v277_v15 = vsel %vm234_vm0, %v232_v9, 0.0  ;;  %v551_v61 = vld [vmem:[#allocation14 + $0x58] sm:$0xff]  ;;  %531 = vmatpush.msrb.mxu1 %v515_v60  ;;  %v513_v3 = vld [vmem:[#allocation14 + $0x28] sm:$0xff]  ;;  %v586_v9 = vld [vmem:[#allocation14 + $0x70] sm:$0xff] }
  0xb6   :  { %v261_v16 = vrot.slane %v260_v11, 1  ;;  %v247_v17 = vrot.slane %v246_v12, 1  ;;  %v285_v18 = vrot.slane %v284_v14, 4  ;;  %v278_v19 = vrot.slane %v277_v15, 4  ;;  %567 = vmatpush.msrb.mxu2 %v551_v61  ;;  %475 = vmatpush.msra.mxu3 %v455_v1  ;;  %v587_v8 = vld [vmem:[#allocation14 + $0x78] sm:$0xff] }
  0xb7   :  { %532 = vmatpush.msrb.mxu1 %v514_v63 }
  0xb8   :  { %v248_v23 = vadd.f32 %v247_v17, %v246_v12  ;;  %v286_v24 = vadd.f32 %v285_v18, %v284_v14  ;;  %v279_v25 = vadd.f32 %v278_v19, %v277_v15  ;;  %v262_v28 = vadd.f32 %v261_v16, %v260_v11  ;;  %568 = vmatpush.msrb.mxu2 %v550_v0  ;;  %v715_v11 = vld [vmem:[%s1134_s8] ss:$0 sm:$0xff]  ;;  %v436_v12 = vld [vmem:[#allocation13 + $0x18] sm:$0xff]  ;;  %v434_v15 = vld [vmem:[#allocation13 + $0x8] sm:$0xff]  ;;  %s963_s8 = smov [#allocation16]  }
  0xb9   :  { %533 = vmatpush.msrb.mxu1 %v513_v3  ;;  %476 = vmatpush.msra.mxu3 %v454_v5  ;;  %v435_v14 = vld [vmem:[#allocation13 + $0x10] sm:$0xff]  ;;  %v433_v18 = vld [vmem:[#allocation13] sm:$0xff]  ;;  %v623_v19 = vld [vmem:[#allocation14 + $0x98] sm:$0xff]  ;;  %s661_s17 = sshll.u32 %s963_s8, 4  ;;  %s662_s17 = int_to_ptr.vmem [resolvable:$true] %s661_s17 }
  0xba   :  { %v346_v29 = vsel %vm345_vm2, %v248_v23, %v241_v22  ;;  %v287_v30 = vrot.slane %v286_v24, 2  ;;  %v280_v31 = vrot.slane %v279_v25, 2  ;;  %569 = vmatpush.msrb.mxu2 %v549_v4  ;;  %496 = vmatpush.msrb.mxu0 %v436_v12  ;;  %v622_v22 = vld [vmem:[#allocation14 + $0x90] sm:$0xff] }
  0xbb   :  { %v348_v33 = vsel %vm347_vm3, %v255_v27, %v346_v29  ;;  %534 = vmatpush.msrb.mxu1 %v512_v6  ;;  %603 = vmatpush.msrb.mxu3 %v587_v8  ;;  %v620_v27 = vld [vmem:[#allocation14 + $0x80] sm:$0xff]  ;;  %vm648_vm3 = vcmp.gt.f32.partialorder %v1063_v2, 0.0 }
  0xbc   :  { %v288_v35 = vadd.f32 %v287_v30, %v286_v24  ;;  %v281_v36 = vadd.f32 %v280_v31, %v279_v25  ;;  %v350_v37 = vsel %vm349_vm4, %v262_v28, %v348_v33  ;;  %570 = vmatpush.msrb.mxu2 %v548_v7  ;;  %497 = vmatpush.msrb.mxu0 %v435_v14  ;;  %v621_v24 = vld [vmem:[#allocation14 + $0x88] sm:$0xff] }
  0xbd   :  { %v352_v40 = vsel %vm351_vm5, %v269_v34, %v350_v37  ;;  %604 = vmatpush.msrb.mxu3 %v586_v9 }
  0xbe   :  { %v289_v38 = vrot.slane %v288_v35, 1  ;;  %v282_v39 = vrot.slane %v281_v36, 1  ;;  %v354_v44 = vsel %vm353_vm6, %v276_v41, %v352_v40  ;;  %498 = vmatpush.msrb.mxu0 %v434_v15 }
  0xbf   :  { %605 = vmatpush.msrb.mxu3 %v585_v10 }
  0xc0   :  { %v283_v42 = vadd.f32 %v282_v39, %v281_v36  ;;  %v290_v43 = vadd.f32 %v289_v38, %v288_v35  ;;  %499 = vmatpush.msrb.mxu0 %v433_v18  ;;  %v961_v35 = vmov 5  }
  0xc1   :  { %606 = vmatpush.msrb.mxu3 %v584_v13  ;;  %712 = vset.pattern.permute.xlu0 %v961_v35 }
  0xc2   :  { %v356_v45 = vsel %vm355_vm7, %v283_v42, %v354_v44  ;;  %639 = vmatpush.msra.mxu0 %v623_v19 }
  0xc3   :  { %v358_v46 = vsel %vm357_vm8, %v290_v43, %v356_v45 }
  0xc4   :  { %678 = vmatmul.msk.f32.vlgmr.msra.gmra.mxu1 %vm299_vm1, %v358_v46  ;;  %640 = vmatpush.msra.mxu0 %v622_v22 }
  0xc6   :  { %641 = vmatpush.msra.mxu0 %v621_v24 }
  0xc8   :  { %642 = vmatpush.msra.mxu0 %v620_v27 }
 0x141   :  { %v378_v56 = vpop.f32.mrf.mxu1 }
 0x142   :  { %v379_v57 = vadd.f32 %v378_v56, %v336_v54  ;;  %v962_v54 = vmov 0  }
 0x144   :  { %v381_v58 = vadd.f32 %v379_v57, %v321_v55  ;;  %v649_v55 = vsel %vm648_vm3, 1, %v962_v54 }
 0x145   :  { %651 = vperm.xlu0 %712, %v649_v55  }
 0x146   :  { %679 = vmatmul.msk.f32.vlgmr.msra.gmra.mxu2 %vm299_vm1, %v381_v58 }
 0x1b7   :  { %v652_v14 = vpop.permute.xlu0 %651 }
 0x1c9   :  { %v410_v16 = vpop.f32.mrf.mxu2 }
 0x1ca   :  { %v1097_v17 = vadd.f32 %v715_v11, %v410_v16 }
 0x1cc   :  { %v680_v20 = vmul.f32 -1.442695, %v1097_v17  ;;  %v681_v21 = vadd.f32 2.3333333, %v1097_v17 }
 0x1ce   :  { %716 = vpow2.f32 %v680_v20  ;;  %v438_v23 = vmul.f32 1.5, %v681_v21 }
 0x1d0   :  { %v1101_v25 = vfloor.f32 %v438_v23 }
 0x1d2   :  { %v440_v28 = vsub.f32 %v438_v23, %v1101_v25  ;;  %v684_v31 = vadd.f32 -1.0, %v1101_v25  ;;  %v686_v34 = vadd.f32 -2.0, %v1101_v25  ;;  %vm448_vm9 = vcmp.eq.f32.partialorder %v1101_v25, 0.0 }
 0x1d3   :  { %vm449_vm10 = vcmp.eq.f32.partialorder %v1101_v25, 1.0  ;;  %vm450_vm11 = vcmp.eq.f32.partialorder %v1101_v25, 2.0  ;;  %v688_v40 = vadd.f32 -3.0, %v1101_v25  ;;  %v690_v0 = vadd.f32 -4.0, %v1101_v25 }
 0x1d4   :  { %v717_v29 = vpop.eup %716  ;;  %v443_v30 = vsub.f32 1.0, %v440_v28  ;;  %v441_v33 = vmul.f32 0.5, %v440_v28  ;;  %vm505_vm12 = vcmp.eq.f32.partialorder %v684_v31, 0.0  ;;  %vm506_vm13 = vcmp.eq.f32.partialorder %v684_v31, 1.0 }
 0x1d5   :  { %v416_v32 = vadd.f32 1.0, %v717_v29  ;;  %vm507_vm14 = vcmp.eq.f32.partialorder %v684_v31, 2.0  ;;  %vm543_vm15 = vcmp.eq.f32.partialorder %v686_v34, 2.0  ;;  %vm542_vm0 = vcmp.eq.f32.partialorder %v686_v34, 1.0 }
 0x1d6   :  { %v444_v36 = vmul.f32 %v443_v30, %v440_v28  ;;  %v446_v37 = vmul.f32 0.5, %v443_v30  ;;  %v442_v41 = vmul.f32 %v441_v33, %v440_v28  ;;  %vm541_vm2 = vcmp.eq.f32.partialorder %v686_v34, 0.0 }
 0x1d7   :  { %718 = vrcp.f32 %v416_v32  ;;  %vm579_vm4 = vcmp.eq.f32.partialorder %v688_v40, 2.0  ;;  %vm578_vm5 = vcmp.eq.f32.partialorder %v688_v40, 1.0  ;;  %v428_v57 = vand.u32 2147483648, %v416_v32 }
 0x1d8   :  { %v445_v38 = vadd.f32 0.5, %v444_v36  ;;  %v447_v39 = vmul.f32 %v446_v37, %v443_v30  ;;  %v426_v2 = vand.u32 2147483647, %v416_v32  ;;  %vm577_vm7 = vcmp.eq.f32.partialorder %v688_v40, 0.0 }
 0x1d9   :  { %vm422_vm8 = vweird.f32 %v416_v32  ;;  %v429_v62 = vor.u32 1.1754944e-38, %v428_v57 }
 0x1da   :  { %v451_v42 = vsel %vm450_vm11, %v447_v39, 0.0  ;;  %v508_v43 = vsel %vm507_vm14, %v447_v39, 0.0  ;;  %v544_v44 = vsel %vm543_vm15, %v447_v39, 0.0  ;;  %v580_v53 = vsel %vm579_vm4, %v447_v39, 0.0 }
 0x1db   :  { %v452_v45 = vsel %vm449_vm10, %v445_v38, %v451_v42  ;;  %v509_v46 = vsel %vm506_vm13, %v445_v38, %v508_v43  ;;  %v545_v47 = vsel %vm542_vm0, %v445_v38, %v544_v44  ;;  %v581_v58 = vsel %vm578_vm5, %v445_v38, %v580_v53 }
 0x1dc   :  { %v453_v48 = vsel %vm448_vm9, %v442_v41, %v452_v45  ;;  %v510_v49 = vsel %vm505_vm12, %v442_v41, %v509_v46  ;;  %v546_v50 = vsel %vm541_vm2, %v442_v41, %v545_v47  ;;  %v582_v61 = vsel %vm577_vm7, %v442_v41, %v581_v58 }
 0x1dd   :  { %v719_v51 = vpop.eup %718  ;;  %682 = vmatmul.msk.f32.vlgmr.msra.gmra.mxu3 %vm299_vm1, %v453_v48  ;;  %685 = vmatmul.msk.f32.vlgmr.msrb.gmra.mxu1 %vm299_vm1, %v510_v49  ;;  %vm427_vm10 = vcmp.eq.f32.partialorder %v426_v2, 8.507059e+37  ;;  %vm615_vm11 = vcmp.eq.f32.partialorder %v690_v0, 2.0  ;;  %vm614_vm12 = vcmp.eq.f32.partialorder %v690_v0, 1.0  ;;  %vm613_vm13 = vcmp.eq.f32.partialorder %v690_v0, 0.0 }
 0x1de   :  { %v418_v52 = vmul.f32 %v719_v51, %v416_v32  ;;  %687 = vmatmul.msk.f32.vlgmr.msrb.gmra.mxu2 %vm299_vm1, %v546_v50  ;;  %vm423_vm6 = vweird.f32 %v719_v51  ;;  %v616_v4 = vsel %vm615_vm11, %v447_v39, 0.0  ;;  %vm653_vm14 = vcmp.eq.s32.totalorder %v652_v14, 1 }
 0x1df   :  { %vm424_vm9 = vmor %vm422_vm8, %vm423_vm6  ;;  %v617_v5 = vsel %vm614_vm12, %v445_v38, %v616_v4 }
 0x1e0   :  { %v419_v56 = vsub.f32 1.0, %v418_v52  ;;  %v618_v6 = vsel %vm613_vm13, %v442_v41, %v617_v5 }
 0x1e2   :  { %v420_v59 = vmul.f32 %v719_v51, %v419_v56 }
 0x1e4   :  { %v421_v60 = vadd.f32 %v719_v51, %v420_v59 }
 0x1e5   :  { %689 = vmatmul.msk.f32.vlgmr.msrb.gmra.mxu3 %vm299_vm1, %v582_v61 }
 0x1e6   :  { %v425_v63 = vsel %vm424_vm9, %v719_v51, %v421_v60 }
 0x1e7   :  { %v430_v1 = vsel %vm427_vm10, %v429_v62, %v425_v63 }
 0x1e8   :  { %v432_v3 = vmul.f32 %v430_v1, %v1097_v17 }
 0x1ea   :  { %683 = vmatmul.msk.f32.vlgmr.msrb.gmra.mxu0 %vm299_vm1, %v432_v3 }
 0x1f2   :  { %691 = vmatmul.msk.f32.vlgmr.msra.gmra.mxu0 %vm299_vm1, %v618_v6 }
 0x25a   :  { %v536_v10 = vpop.f32.mrf.mxu1 }
 0x260   :  { %v478_v7 = vpop.f32.mrf.mxu3 }
 0x261   :  { %v572_v12 = vpop.f32.mrf.mxu2 }
 0x267   :  { %v501_v8 = vpop.f32.mrf.mxu0 }
 0x268   :  { %v502_v9 = vadd.f32 %v501_v8, %v478_v7  ;;  %v608_v15 = vpop.f32.mrf.mxu3 }
 0x26a   :  { %v539_v11 = vadd.f32 %v536_v10, %v502_v9 }
 0x26c   :  { %v575_v13 = vadd.f32 %v572_v12, %v539_v11 }
 0x26e   :  { %v611_v16 = vadd.f32 %v608_v15, %v575_v13 }
 0x26f   :  { %v644_v17 = vpop.f32.mrf.mxu0 }
 0x270   :  { %v647_v18 = vadd.f32 %v644_v17, %v611_v16 }
 0x272   :  { %v654_v19 = vsel %vm653_vm14, %v647_v18, %v1073_v26 }
 0x273   :  { %655 = vst.msk [vmem:[#allocation16] sm:$0xff] %vm299_vm1, %v654_v19 }
 0x274   :  { %666 = dma.vmem_to_hbm [thread:$0]  %s662_s17, 128, %s664_s20, [#allocation4]  }
 0x275   :  { %946 = dma.done.wait [#allocation4], 128  }
 0x276   :  { %947 = vsyncadd [#allocation4], 4294967168 }
 0x277   :  { %671 = vsyncpa [#allocation3], 1 }
 0x278   :  { %672 = vsyncpa [#allocation6], 1 }
 0x279   :  { %673 = vsyncpa [#allocation9], 1 }
 0x27a   :  { %674 = vsyncpa [#allocation12], 1 }
 0x27b   :  { %675 = vsyncpa [#allocation15], 1 }
 0x27c   :  { %676 = vsyncpa [#allocation4], 1 }

</bundles_post_ra>
